<compile_context>
chip_gen: v7x
topology: tpu7x:2x2x1
jax: 0.10.0
libtpu: 0.0.40
codegen_flags: <defaults>
</compile_context>

<pallas_src>
import jax
import jax.numpy as jnp
from jax.experimental import pallas as pl
from jax.experimental.pallas import tpu as pltpu


def mlp_kernel(x_ref, w1_ref, b1_ref, w2_ref, b2_ref, o_ref):
    # x_ref : (M, TN)  VMEM   -- input tile, rows (batch) on the lane axis
    # w1_ref: (H, M)   VMEM   -- fc1 weight, resident across grid steps
    # b1_ref: (H, 1)   VMEM
    # w2_ref: (1, H)   VMEM   -- fc2 weight (out_features == 1)
    # b2_ref: (1, 1)   VMEM
    # o_ref : (1, TN)  VMEM   -- lane-dense output tile
    x = x_ref[...]
    # fc1 + ReLU : (H, M) @ (M, TN) -> (H, TN), f32 MXU accumulate
    hid = jnp.dot(w1_ref[...], x, preferred_element_type=jnp.float32) + b1_ref[...]
    hid = jnp.maximum(hid, 0.0)
    # fc2 + ReLU : (1, H) @ (H, TN) -> (1, TN)
    out = jnp.dot(w2_ref[...], hid, preferred_element_type=jnp.float32) + b2_ref[...]
    o_ref[...] = jnp.maximum(out, 0.0).astype(o_ref.dtype)


def mlp_forward(inputs, w1, b1, w2, b2, tn_max=4096):
    """inputs: (T, E, mod_size) -> output: torch.squeeze of (T, E, 1)."""
    T, E, M = inputs.shape
    H = w1.shape[1]
    N = T * E

    # Lane-dense layout: rows on the lane axis -> x as (M, N).
    xT = inputs.reshape(N, M).T  # (M, N)

    # Tile the lane axis; tile must be a multiple of 128 lanes.
    n_aligned = ((N + 127) // 128) * 128
    tn = min(tn_max, n_aligned)
    n_pad = pl.cdiv(N, tn) * tn
    if n_pad != N:
        xT = jnp.pad(xT, ((0, 0), (0, n_pad - N)))

    w1T = w1.T             # (H, M)
    b1c = b1.reshape(H, 1)  # (H, 1)

    grid = (n_pad // tn,)

    out = pl.pallas_call(
        mlp_kernel,
        out_shape=jax.ShapeDtypeStruct((1, n_pad), jnp.float32),
        grid=grid,
        in_specs=[
            pl.BlockSpec((M, tn), lambda i: (0, i)),   # x tile, pipelined over N
            pl.BlockSpec((H, M), lambda i: (0, 0)),    # w1 resident
            pl.BlockSpec((H, 1), lambda i: (0, 0)),    # b1 resident
            pl.BlockSpec((1, H), lambda i: (0, 0)),    # w2 resident
            pl.BlockSpec((1, 1), lambda i: (0, 0)),    # b2 resident
        ],
        out_specs=pl.BlockSpec((1, tn), lambda i: (0, i)),
        compiler_params=pltpu.CompilerParams(
            dimension_semantics=("parallel",),         # megacore sharding on v7x
            vmem_limit_bytes=32 << 20,                 # explicit, generous headroom
        ),
    )(xT, w1T, b1c, w2, b2)

    # drop padding, restore (T, E), then torch.squeeze semantics
    out = out[0, :N].reshape(T, E)
    return jnp.squeeze(out)


def init_params(key, mod_size, hidden_size):
    """Deterministic init mimicking torch.nn.Linear default (uniform +/- 1/sqrt(fan_in))."""
    k1, k2, k3, k4 = jax.random.split(key, 4)
    bound1 = 1.0 / jnp.sqrt(mod_size)
    bound2 = 1.0 / jnp.sqrt(hidden_size)
    # stored as (in, out); the wrapper transposes for the lane-dense kernel layout
    w1 = jax.random.uniform(k1, (mod_size, hidden_size), jnp.float32, -bound1, bound1)
    b1 = jax.random.uniform(k2, (1, hidden_size), jnp.float32, -bound1, bound1)
    w2 = jax.random.uniform(k3, (1, hidden_size), jnp.float32, -bound2, bound2)
    b2 = jax.random.uniform(k4, (1, 1), jnp.float32, -bound2, bound2)
    return w1, b1, w2, b2


if __name__ == "__main__":
    key = jax.random.PRNGKey(0)
    T, E, mod_size, hidden_size = 2, 8, 16, 32

    k_in, k_p = jax.random.split(key)
    inputs = jax.random.normal(k_in, (T, E, mod_size), jnp.float32)
    w1, b1, w2, b2 = init_params(k_p, mod_size, hidden_size)

    out = mlp_forward(inputs, w1, b1, w2, b2)
    jax.block_until_ready(out)

    # reference check in plain JAX
    hid_ref = jnp.maximum(inputs @ w1 + b1[0], 0.0)
    out_ref = jnp.maximum(hid_ref @ w2[0][:, None] + b2[0, 0], 0.0)
    out_ref = jnp.squeeze(out_ref)
    assert out.shape == out_ref.shape, (out.shape, out_ref.shape)
    assert jnp.allclose(out, out_ref, atol=1e-5), "mismatch vs reference"

    print("KERNEL_OK")
</pallas_src>

<mosaic_0001>
module attributes {stable_mosaic.version = 11 : i64} {
  func.func @mlp_kernel(%arg0: i32, %arg1: memref<16x128xf32, #tpu.memory_space<vmem>>, %arg2: memref<32x16xf32, #tpu.memory_space<vmem>>, %arg3: memref<32x1xf32, #tpu.memory_space<vmem>>, %arg4: memref<1x32xf32, #tpu.memory_space<vmem>>, %arg5: memref<1x1xf32, #tpu.memory_space<vmem>>, %arg6: memref<1x128xf32, #tpu.memory_space<vmem>>) attributes {dimension_semantics = [#tpu.dimension_semantics<parallel>], iteration_bounds = array<i64: 1>, scalar_prefetch = 0 : i64, scratch_operands = 0 : i64, tpu.core_type = #tpu.core_type<tc>, window_params = [{transform_indices = @transform_0, window_bounds = array<i64: 16, 128>}, {pipeline_mode = #tpu.pipeline_mode<synchronous>, transform_indices = @transform_1, window_bounds = array<i64: 32, 16>}, {pipeline_mode = #tpu.pipeline_mode<synchronous>, transform_indices = @transform_2, window_bounds = array<i64: 32, 1>}, {pipeline_mode = #tpu.pipeline_mode<synchronous>, transform_indices = @transform_3, window_bounds = array<i64: 1, 32>}, {pipeline_mode = #tpu.pipeline_mode<synchronous>, transform_indices = @transform_4, window_bounds = array<i64: 1, 1>}, {transform_indices = @transform_5, window_bounds = array<i64: 1, 128>}]} {
    %c0 = arith.constant 0 : index
    %c0_0 = arith.constant 0 : index
    %0 = vector.load %arg1[%c0, %c0_0] : memref<16x128xf32, #tpu.memory_space<vmem>>, vector<16x128xf32>
    %c0_1 = arith.constant 0 : index
    %c0_2 = arith.constant 0 : index
    %1 = vector.load %arg2[%c0_1, %c0_2] : memref<32x16xf32, #tpu.memory_space<vmem>>, vector<32x16xf32>
    %cst = arith.constant dense<0.000000e+00> : vector<32x128xf32>
    %2 = tpu.matmul %1, %0, %cst {dimension_numbers = #tpu.dot_dimension_numbers<[1], [0], [0], [1], [0, 0, 1, 1], [], []>} : vector<32x16xf32>, vector<16x128xf32>, vector<32x128xf32> -> vector<32x128xf32>
    %c0_3 = arith.constant 0 : index
    %c0_4 = arith.constant 0 : index
    %3 = vector.load %arg3[%c0_3, %c0_4] : memref<32x1xf32, #tpu.memory_space<vmem>>, vector<32x1xf32>
    %4 = vector.broadcast %3 : vector<32x1xf32> to vector<32x128xf32>
    %5 = arith.addf %2, %4 : vector<32x128xf32>
    %cst_5 = arith.constant 0.000000e+00 : f32
    %6 = vector.broadcast %cst_5 : f32 to vector<32x128xf32>
    %7 = arith.maximumf %5, %6 : vector<32x128xf32>
    %c0_6 = arith.constant 0 : index
    %c0_7 = arith.constant 0 : index
    %8 = vector.load %arg4[%c0_6, %c0_7] : memref<1x32xf32, #tpu.memory_space<vmem>>, vector<1x32xf32>
    %cst_8 = arith.constant dense<0.000000e+00> : vector<1x128xf32>
    %9 = tpu.matmul %8, %7, %cst_8 {dimension_numbers = #tpu.dot_dimension_numbers<[1], [0], [0], [1], [0, 0, 1, 1], [], []>} : vector<1x32xf32>, vector<32x128xf32>, vector<1x128xf32> -> vector<1x128xf32>
    %c0_9 = arith.constant 0 : index
    %c0_10 = arith.constant 0 : index
    %10 = vector.load %arg5[%c0_9, %c0_10] : memref<1x1xf32, #tpu.memory_space<vmem>>, vector<1x1xf32>
    %11 = vector.broadcast %10 : vector<1x1xf32> to vector<1x128xf32>
    %12 = arith.addf %9, %11 : vector<1x128xf32>
    %cst_11 = arith.constant 0.000000e+00 : f32
    %13 = vector.broadcast %cst_11 : f32 to vector<1x128xf32>
    %14 = arith.maximumf %12, %13 : vector<1x128xf32>
    %c0_12 = arith.constant 0 : index
    %c0_13 = arith.constant 0 : index
    %15 = vector.load %arg6[%c0_12, %c0_13] : memref<1x128xf32, #tpu.memory_space<vmem>>, vector<1x128xf32>
    tpu.vector_store %arg6[%c0_12, %c0_13], %14 {strides = array<i32>} : memref<1x128xf32, #tpu.memory_space<vmem>>, vector<1x128xf32>,
    return
  }
  func.func @transform_0(%arg0: i32) -> (i32, i32) {
    %c0_i32 = arith.constant 0 : i32
    %c0_i32_0 = arith.constant 0 : i32
    return %c0_i32, %arg0 : i32, i32
  }
  func.func @transform_1(%arg0: i32) -> (i32, i32) {
    %c0_i32 = arith.constant 0 : i32
    %c0_i32_0 = arith.constant 0 : i32
    %c0_i32_1 = arith.constant 0 : i32
    return %c0_i32, %c0_i32_0 : i32, i32
  }
  func.func @transform_2(%arg0: i32) -> (i32, i32) {
    %c0_i32 = arith.constant 0 : i32
    %c0_i32_0 = arith.constant 0 : i32
    %c0_i32_1 = arith.constant 0 : i32
    return %c0_i32, %c0_i32_0 : i32, i32
  }
  func.func @transform_3(%arg0: i32) -> (i32, i32) {
    %c0_i32 = arith.constant 0 : i32
    %c0_i32_0 = arith.constant 0 : i32
    %c0_i32_1 = arith.constant 0 : i32
    return %c0_i32, %c0_i32_0 : i32, i32
  }
  func.func @transform_4(%arg0: i32) -> (i32, i32) {
    %c0_i32 = arith.constant 0 : i32
    %c0_i32_0 = arith.constant 0 : i32
    %c0_i32_1 = arith.constant 0 : i32
    return %c0_i32, %c0_i32_0 : i32, i32
  }
  func.func @transform_5(%arg0: i32) -> (i32, i32) {
    %c0_i32 = arith.constant 0 : i32
    %c0_i32_0 = arith.constant 0 : i32
    return %c0_i32, %arg0 : i32, i32
  }
}

</mosaic_0001>

<bundles_post_ra>
// kernel: tpu_custom_call.1
= control target key start
LH: loop header
LB: loop body
LE: loop exit
PB: predicated region body
PF: predicated region fallthrough
CT: control target
= control target key end

     0   :  { %s421_s0 = inlined_call_operand.vmem [shape: f32[16,128], index: 0, kind: input, shape index: {}]   ;;  %s422_s1 = inlined_call_operand.vmem [shape: f32[32,16], index: 1, kind: input, shape index: {}]   ;;  %s423_s2 = inlined_call_operand.vmem [shape: f32[32,1], index: 2, kind: input, shape index: {}]   ;;  %s424_s3 = inlined_call_operand.vmem [shape: f32[1,32], index: 3, kind: input, shape index: {}]   ;;  %s425_s4 = inlined_call_operand.<no memory space> [shape: f32[1,1], index: 4, kind: input, shape index: {}]   ;;  %s426_s5 = inlined_call_operand.hbm [shape: f32[1,128], index: 5, kind: output, shape index: {}]  }
   0x1   :  { %v10_v0 = vstv %s425_s4 }
   0x2   :  { %11 = vst [vmem:[#allocation2] sm:$0x1] %v10_v0 }
   0x3   :  { %v23_v1 = vld [vmem:[%s421_s0] sm:$0xff]  ;;  %v24_v2 = vld [vmem:[%s421_s0 + $0x8] sm:$0xff]  ;;  %vm53_vm0 = vcmask 130048   ;;  %v334_v5 = vmov 0   ;;  %v31_v7 = vld [vmem:[%s423_s2 + $0x10] sm:$0xff] }
   0x4   :  { %v25_v3 = vld [vmem:[%s422_s1] sm:$0xff]  ;;  %v293_v4 = vpack.c.bf16 %v24_v2, %v23_v1  ;;  %308 = vset.pattern.permute.xlu0 %v334_v5  ;;  %309 = vset.pattern.permute.xlu1 %v334_v5 }
   0x5   :  { %276 = vmatprep.mubr.msk.f32.mxu0 %vm53_vm0, %v25_v3  ;;  %v29_v6 = vld [vmem:[%s423_s2] sm:$0xff] }
   0x6   :  { %294 = vmatprep.subr.bf16.mxu0 %v293_v4  ;;  %35 = vperm.xlu0 %308, %v29_v6  }
   0x7   :  { %12 = vsyncpa [#allocation4], 0  ;;  %296 = vmatpush3.bf16.msra.mxu0 %v293_v4  ;;  %v26_v8 = vld [vmem:[%s422_s1 + $0x8] sm:$0xff]  ;;  %45 = vperm.xlu1 %309, %v31_v7   ;;  %v27_v10 = vld [vmem:[%s422_s1 + $0x10] sm:$0xff]  ;;  %v335_v14 = vmov 0.0|0.0   ;;  %vm336_vm1 = vmmov 0   ;;  %v162_v35 = vlaneseq }
   0x8   :  { %v30_v9 = vld [vmem:[%s423_s2 + $0x8] sm:$0xff]  ;;  %v32_v11 = vld [vmem:[%s423_s2 + $0x18] sm:$0xff]  ;;  %297 = vmatprep.subr.bf16.mxu1 %v335_v14  ;;  %v337_v15 = vmov 0.0   ;;  %v155_v34 = vld [vmem:[%s424_s3] sm:$0x1]  ;;  %vm166_vm2 = vcmask 261120  }
   0x9   :  { %v28_v12 = vld [vmem:[%s422_s1 + $0x18] sm:$0xff]  ;;  %v156_v13 = vld [vmem:[#allocation2] sm:$0x1]  ;;  %290 = vmatprep.mubr.msk.f32.mxu1 %vm336_vm1, %v337_v15  ;;  %v163_v36 = vshrl.u32 %v162_v35, 7  ;;  %s338_s13 = smov [#allocation3]  }
   0xa   :  { %277 = vmatmul.mubr.msk.f32.vlgmr.msra.gmra.mrb[0].mxu0 %vm53_vm0, %v26_v8  ;;  %40 = vperm.xlu0 %308, %v30_v9   ;;  %s248_s14 = sshll.u32 %s338_s13, 4  ;;  %s249_s14 = int_to_ptr.vmem [resolvable:$true] %s248_s14 }
   0xb   :  { %279 = vmatprep.mubr.msk.f32.mxu0 %vm53_vm0, %v27_v10  ;;  %50 = vperm.xlu1 %309, %v32_v11   ;;  %v164_v37 = vsub.s32 0, %v163_v36  ;;  %s310_s15 = scalar_lea.vmem %s249_s14, 16  ;;  %s314_s16 = scalar_lea.vmem %s249_s14, 32 }
   0xc   :  { %p311_p0 = scmp.ne.s32.totalorder %s249_s14, %s310_s15  ;;  %p315_p1 = scmp.lt.s32.totalorder %s249_s14, %s249_s14 }
   0xd   :  { %p316_p2 = scmp.lt.s32.totalorder %s314_s16, %s310_s15 }
   0xe   :  { %280 = vmatmul.mubr.msk.f32.gmra.mrb[2].mxu0 %vm53_vm0, %v28_v12  ;;  %159 = vperm.xlu0 %308, %v156_v13  }
   0xf   :  { %p317_p3 = por %p316_p2, %p315_p1 }
  0x11   :  { %p318_p4 = pnand %p317_p3, %p311_p0 }
  0x85   :  { %v36_v16 = vpop.permute.xlu0 %35 }
  0x86   :  { %v46_v17 = vpop.permute.xlu1 %45 }
  0x89   :  { %v41_v18 = vpop.permute.xlu0 %40 }
  0x8a   :  { %v51_v24 = vpop.permute.xlu1 %50 }
  0x8d   :  { %v160_v38 = vpop.permute.xlu0 %159 }
  0x8e   :  { %v165_v39 = vrot.slane %v160_v38, %v164_v37 }
  0xdd   :  { %v278_v19 = vpop.f32.mrb[0].mxu0 }
  0xde   :  { %v138_v20 = vadd.f32 %v278_v19, %v41_v18  ;;  %v132_v21 = vpop.f32.mrb[1].mxu0 }
  0xdf   :  { %v133_v22 = vadd.f32 %v132_v21, %v36_v16 }
  0xe0   :  { %v152_v23 = vmax.f32 %v138_v20, 0.0 }
  0xe1   :  { %v151_v25 = vmax.f32 %v133_v22, 0.0  ;;  %v281_v26 = vpop.f32.mrb[2].mxu0 }
  0xe2   :  { %v148_v27 = vadd.f32 %v281_v26, %v51_v24  ;;  %v142_v28 = vpop.f32.mrb[3].mxu0 }
  0xe3   :  { %v143_v29 = vadd.f32 %v142_v28, %v46_v17  ;;  %v298_v30 = vpack.c.bf16 %v152_v23, %v151_v25 }
  0xe4   :  { %v154_v31 = vmax.f32 %v148_v27, 0.0 }
  0xe5   :  { %v153_v32 = vmax.f32 %v143_v29, 0.0  ;;  %299 = vmatpush3.bf16.msra.mxu1 %v298_v30 }
  0xe6   :  { %300 = vmatprep.subr.bf16.mxu1 %v335_v14 }
  0xe7   :  { %v301_v33 = vpack.c.bf16 %v154_v31, %v153_v32 }
  0xe9   :  { %302 = vmatpush3.bf16.msra.mxu1 %v301_v33 }
  0xec   :  { %291 = vmatmul.mubr.msk.f32.vlgmr.msra.gmra.mrb[0].mxu1 %vm166_vm2, %v155_v34 }
 0x1bf   :  { %v236_v40 = vpop.f32.mrb[0].mxu1 }
 0x1c0   :  { %v237_v41 = vadd.f32 %v236_v40, %v165_v39  ;;  %v292_v42 = vpop.f32.mrb[1].mxu1 }
 0x1c2   :  { %v240_v43 = vmax.f32 %v237_v41, 0.0 }
 0x1c4   :  { %241 = vst [vmem:[#allocation3] sm:$0x1] %v240_v43 }
 0x1c5   :  { %321 = shalt.err (!%p318_p4)
}
 0x1c6   :  { %s322_s18 = scalar_lea.hbm %s426_s5, 16 }
 0x1c7   :  { %p323_p5 = scmp.ne.s32.totalorder %s426_s5, %s322_s18  ;;  %p326_p6 = scmp.lt.u32.totalorder %s322_s18, %s426_s5 }
 0x1c9   :  { %p328_p7 = pnand %p326_p6, %p323_p5 }
 0x1cb   :  { %331 = shalt.err (!%p328_p7)
}
 0x1cc   :  { %251 = dma.vmem_to_hbm [thread:$0]  %s249_s14, 16, %s426_s5, [#allocation4]  }
 0x1cd   :  { %332 = dma.done.wait [#allocation4], 16  }
 0x1ce   :  { %333 = vsyncadd [#allocation4], 4294967280 }
 0x1cf   :  { %255 = vsyncpa [#allocation4], 1 }

</bundles_post_ra>
